<compile_context>
chip_gen: v5e
topology: v5e:2x2
jax: 0.10.0
libtpu: 0.0.40
codegen_flags: <defaults>
</compile_context>

<pallas_src>
import jax
import jax.numpy as jnp
from jax.experimental import pallas as pl
from jax.experimental.pallas import tpu as pltpu

LN_EPS = 1e-5
LEAKY_SLOPE = 0.1          # nn.LeakyReLU(0.1) in the PyTorch spec
DEFAULT_TILE_B = 256       # MXU-width aligned batch tile (v6e/v7x: 256; 128 is fine on v5e)


def _round_up(x, m):
    return (x + m - 1) // m * m


def _leaky_relu(h):
    return jnp.where(h > 0, h, LEAKY_SLOPE * h)


def _layernorm_onepass(h, gamma, beta):
    """LayerNorm via two independent lane reductions (sum, sum-of-squares)."""
    inv_n = 1.0 / h.shape[-1]
    mean = jnp.sum(h, axis=-1, keepdims=True) * inv_n
    ex2 = jnp.sum(h * h, axis=-1, keepdims=True) * inv_n
    var = ex2 - mean * mean
    return (h - mean) * jax.lax.rsqrt(var + LN_EPS) * gamma + beta


def _reward_kernel(obs_ref, act_ref, p1_ref, p2_ref, b3_ref, out_ref):
    """One batch tile of the full forward pass.

    obs_ref : [TILE_B, S]   (VMEM, per-tile, pipelined)
    act_ref : [TILE_B, A]   (VMEM, per-tile, pipelined)
    p1_ref  : [S+A+3, H1]   (VMEM, resident) rows: W1 | b1 | gamma1 | beta1
    p2_ref  : [H1+4,  H2]   (VMEM, resident) rows: W2 | b2 | gamma2 | beta2 | w3
    b3_ref  : [1, 1]        (SMEM) scalar output bias
    out_ref : [1, TILE_B]   lane-dense per-tile rewards
    """
    in_dim = obs_ref.shape[-1] + act_ref.shape[-1]
    h1 = p2_ref.shape[0] - 4

    # ---- Layer 1: single fused matmul over the lane-concatenated input ----
    x = jnp.concatenate([obs_ref[...], act_ref[...]], axis=-1)    # [TILE_B, S+A]
    h = jnp.dot(x, p1_ref[:in_dim, :], preferred_element_type=jnp.float32)
    h = h + p1_ref[in_dim:in_dim + 1, :]
    h = _leaky_relu(_layernorm_onepass(h,
                                       p1_ref[in_dim + 1:in_dim + 2, :],
                                       p1_ref[in_dim + 2:in_dim + 3, :]))

    # ---- Layer 2: Linear -> LayerNorm -> LeakyReLU ----
    h = jnp.dot(h, p2_ref[:h1, :], preferred_element_type=jnp.float32)
    h = h + p2_ref[h1:h1 + 1, :]
    h = _leaky_relu(_layernorm_onepass(h,
                                       p2_ref[h1 + 1:h1 + 2, :],
                                       p2_ref[h1 + 2:h1 + 3, :]))

    # ---- Output head (H2 -> 1): VPU broadcast-mul + lane reduce, then an XLU
    #      transpose so the store is a lane-dense, unmasked [1, TILE_B] vst. ----
    w3 = p2_ref[h1 + 3:h1 + 4, :]                                 # [1, H2]
    logits = jnp.sum(h * w3, axis=-1, keepdims=True) + b3_ref[0, 0]   # [TILE_B, 1]
    out_ref[...] = jnp.tanh(logits).T                             # [1, TILE_B]


def reward_forward(obs, action, params, *, tile_b=DEFAULT_TILE_B):
    """obs: [B, S], action: [B, A] -> rewards [B] (float32)."""
    p1, p2, b3 = params
    B, S = obs.shape
    A = action.shape[-1]

    tb = min(tile_b, _round_up(B, 8))        # small batches: one 8-row-aligned tile
    num_tiles = pl.cdiv(B, tb)
    b_pad = num_tiles * tb
    if b_pad != B:                            # pad so every tile is fully in-bounds
        obs = jnp.pad(obs, ((0, b_pad - B), (0, 0)))
        action = jnp.pad(action, ((0, b_pad - B), (0, 0)))

    out = pl.pallas_call(
        _reward_kernel,
        out_shape=jax.ShapeDtypeStruct((num_tiles, 1, tb), jnp.float32),
        grid=(num_tiles,),
        in_specs=[
            pl.BlockSpec((tb, S), lambda i: (i, 0)),             # obs tile (pipelined)
            pl.BlockSpec((tb, A), lambda i: (i, 0)),             # action tile (pipelined)
            pl.BlockSpec(p1.shape, lambda i: (0, 0)),            # packed W1/LN1 (resident)
            pl.BlockSpec(p2.shape, lambda i: (0, 0)),            # packed W2/LN2/w3 (resident)
            pl.BlockSpec(memory_space=pltpu.MemorySpace.SMEM),   # scalar b3
        ],
        out_specs=pl.BlockSpec((None, 1, tb), lambda i: (i, 0, 0)),
        compiler_params=pltpu.CompilerParams(
            dimension_semantics=("parallel",)),                  # megacore on v7x
    )(obs, action, p1, p2, b3)
    return out.reshape(-1)[:B]


reward_forward_jit = jax.jit(reward_forward)


# ----------------------------- parameters ---------------------------------

def _orthogonal(key, rows, cols, gain):
    """Orthogonal init matching nn.init.orthogonal_ semantics (gain-scaled)."""
    n = max(rows, cols)
    a = jax.random.normal(key, (n, n), dtype=jnp.float32)
    q, r = jnp.linalg.qr(a)
    q = q * jnp.sign(jnp.diagonal(r))
    return gain * q[:rows, :cols]


def init_params(key, state_dim, action_dim, hidden_dims):
    """Packs the MLP parameters into two VMEM slabs + one SMEM scalar.

    p1: [S+A+3, H1]  rows 0..S+A-1 = W1 (as [in, out]), then b1, ln1.gamma, ln1.beta
    p2: [H1+4,  H2]  rows 0..H1-1  = W2 (as [in, out]), then b2, ln2.gamma, ln2.beta, w3
    b3: [1, 1]       scalar output bias
    """
    in_dim = state_dim + action_dim
    h1, h2 = hidden_dims
    k1, k2, k3 = jax.random.split(key, 3)
    w1 = _orthogonal(k1, h1, in_dim, 0.1).T              # [in_dim, h1]
    w2 = _orthogonal(k2, h2, h1, 0.1).T                  # [h1, h2]
    w3 = _orthogonal(k3, 1, h2, 0.1)                     # [1, h2]
    z1, o1 = jnp.zeros((1, h1), jnp.float32), jnp.ones((1, h1), jnp.float32)
    z2, o2 = jnp.zeros((1, h2), jnp.float32), jnp.ones((1, h2), jnp.float32)
    p1 = jnp.concatenate([w1, z1, o1, z1], axis=0).astype(jnp.float32)
    p2 = jnp.concatenate([w2, z2, o2, z2, w3], axis=0).astype(jnp.float32)
    b3 = jnp.zeros((1, 1), jnp.float32)
    return (p1, p2, b3)


def reference_forward(obs, action, params):
    """Pure-JAX reference matching the PyTorch forward (standard two-pass LN)."""
    p1, p2, b3 = params
    in_dim = obs.shape[-1] + action.shape[-1]
    h1 = p2.shape[0] - 4

    def ln(h, gamma, beta):
        mean = jnp.mean(h, axis=-1, keepdims=True)
        var = jnp.mean((h - mean) ** 2, axis=-1, keepdims=True)
        return (h - mean) / jnp.sqrt(var + LN_EPS) * gamma + beta

    x = jnp.concatenate([obs, action], axis=-1).astype(jnp.float32)
    h = x @ p1[:in_dim] + p1[in_dim]
    h = _leaky_relu(ln(h, p1[in_dim + 1], p1[in_dim + 2]))
    h = h @ p2[:h1] + p2[h1]
    h = _leaky_relu(ln(h, p2[h1 + 1], p2[h1 + 2]))
    logits = h @ p2[h1 + 3] + b3[0, 0]
    return jnp.tanh(logits)


if __name__ == "__main__":
    key = jax.random.PRNGKey(0)
    k_obs, k_act, k_par = jax.random.split(key, 3)

    batch = 8
    state_dim = 24
    action_dim = 8
    hidden_dims = (256, 256)   # PyTorch module's default hidden_dims

    obs = jax.random.normal(k_obs, (batch, state_dim), dtype=jnp.float32)
    action = jax.random.normal(k_act, (batch, action_dim), dtype=jnp.float32)
    params = init_params(k_par, state_dim, action_dim, hidden_dims)

    rewards = reward_forward_jit(obs, action, params)     # [batch]
    rewards = jax.block_until_ready(rewards)

    ref = reference_forward(obs, action, params)
    assert rewards.shape == (batch,), rewards.shape
    assert jnp.allclose(rewards, ref, atol=1e-5, rtol=1e-4), (rewards, ref)

    print("KERNEL_OK")
</pallas_src>

<mosaic_0001>
module attributes {stable_mosaic.version = 11 : i64} {
  func.func @_reward_kernel(%arg0: i32, %arg1: memref<8x24xf32, #tpu.memory_space<vmem>>, %arg2: memref<8x8xf32, #tpu.memory_space<vmem>>, %arg3: memref<35x256xf32, #tpu.memory_space<vmem>>, %arg4: memref<260x256xf32, #tpu.memory_space<vmem>>, %arg5: memref<1x1xf32, #tpu.memory_space<smem>>, %arg6: memref<1x1x8xf32, #tpu.memory_space<vmem>>) attributes {dimension_semantics = [#tpu.dimension_semantics<parallel>], iteration_bounds = array<i64: 1>, scalar_prefetch = 0 : i64, scratch_operands = 0 : i64, tpu.core_type = #tpu.core_type<tc>, window_params = [{transform_indices = @transform_0, window_bounds = array<i64: 8, 24>}, {transform_indices = @transform_1, window_bounds = array<i64: 8, 8>}, {pipeline_mode = #tpu.pipeline_mode<synchronous>, transform_indices = @transform_2, window_bounds = array<i64: 35, 256>}, {pipeline_mode = #tpu.pipeline_mode<synchronous>, transform_indices = @transform_3, window_bounds = array<i64: 260, 256>}, {transform_indices = @transform_4, window_bounds = array<i64: 1, 1>}, {transform_indices = @transform_5, window_bounds = array<i64: 1, 1, 8>}]} {
    %c0 = arith.constant 0 : index
    %c0_0 = arith.constant 0 : index
    %0 = vector.load %arg1[%c0, %c0_0] : memref<8x24xf32, #tpu.memory_space<vmem>>, vector<8x24xf32>
    %c0_1 = arith.constant 0 : index
    %c0_2 = arith.constant 0 : index
    %1 = vector.load %arg2[%c0_1, %c0_2] : memref<8x8xf32, #tpu.memory_space<vmem>>, vector<8x8xf32>
    %2 = tpu.concatenate %0, %1 in 1 : vector<8x24xf32>, vector<8x8xf32> -> vector<8x32xf32>
    %c0_3 = arith.constant 0 : index
    %c0_4 = arith.constant 0 : index
    %3 = vector.load %arg3[%c0_3, %c0_4] : memref<35x256xf32, #tpu.memory_space<vmem>>, vector<32x256xf32>
    %cst = arith.constant dense<0.000000e+00> : vector<8x256xf32>
    %4 = tpu.matmul %2, %3, %cst {dimension_numbers = #tpu.dot_dimension_numbers<[1], [0], [0], [1], [0, 0, 1, 1], [], []>} : vector<8x32xf32>, vector<32x256xf32>, vector<8x256xf32> -> vector<8x256xf32>
    %c32 = arith.constant 32 : index
    %c0_5 = arith.constant 0 : index
    %5 = vector.load %arg3[%c32, %c0_5] : memref<35x256xf32, #tpu.memory_space<vmem>>, vector<1x256xf32>
    %6 = vector.broadcast %5 : vector<1x256xf32> to vector<8x256xf32>
    %7 = arith.addf %4, %6 : vector<8x256xf32>
    %c33 = arith.constant 33 : index
    %c0_6 = arith.constant 0 : index
    %8 = vector.load %arg3[%c33, %c0_6] : memref<35x256xf32, #tpu.memory_space<vmem>>, vector<1x256xf32>
    %c34 = arith.constant 34 : index
    %c0_7 = arith.constant 0 : index
    %9 = vector.load %arg3[%c34, %c0_7] : memref<35x256xf32, #tpu.memory_space<vmem>>, vector<1x256xf32>
    %cst_8 = arith.constant dense<0.000000e+00> : vector<8xf32>
    %10 = vector.multi_reduction <add>, %7, %cst_8 [1] : vector<8x256xf32> to vector<8xf32>
    %11 = vector.shape_cast %10 : vector<8xf32> to vector<8x1xf32>
    %cst_9 = arith.constant 3.906250e-03 : f32
    %12 = vector.broadcast %cst_9 : f32 to vector<8x1xf32>
    %13 = arith.mulf %11, %12 : vector<8x1xf32>
    %14 = arith.mulf %7, %7 : vector<8x256xf32>
    %cst_10 = arith.constant dense<0.000000e+00> : vector<8xf32>
    %15 = vector.multi_reduction <add>, %14, %cst_10 [1] : vector<8x256xf32> to vector<8xf32>
    %16 = vector.shape_cast %15 : vector<8xf32> to vector<8x1xf32>
    %cst_11 = arith.constant 3.906250e-03 : f32
    %17 = vector.broadcast %cst_11 : f32 to vector<8x1xf32>
    %18 = arith.mulf %16, %17 : vector<8x1xf32>
    %19 = arith.mulf %13, %13 : vector<8x1xf32>
    %20 = arith.subf %18, %19 : vector<8x1xf32>
    %21 = vector.broadcast %13 : vector<8x1xf32> to vector<8x256xf32>
    %22 = arith.subf %7, %21 : vector<8x256xf32>
    %cst_12 = arith.constant 9.99999974E-6 : f32
    %23 = vector.broadcast %cst_12 : f32 to vector<8x1xf32>
    %24 = arith.addf %20, %23 : vector<8x1xf32>
    %25 = math.rsqrt %24 : vector<8x1xf32>
    %26 = vector.broadcast %25 : vector<8x1xf32> to vector<8x256xf32>
    %27 = arith.mulf %22, %26 : vector<8x256xf32>
    %28 = vector.broadcast %8 : vector<1x256xf32> to vector<8x256xf32>
    %29 = arith.mulf %27, %28 : vector<8x256xf32>
    %30 = vector.broadcast %9 : vector<1x256xf32> to vector<8x256xf32>
    %31 = arith.addf %29, %30 : vector<8x256xf32>
    %cst_13 = arith.constant 0.000000e+00 : f32
    %32 = vector.broadcast %cst_13 : f32 to vector<8x256xf32>
    %33 = arith.cmpf ogt, %31, %32 : vector<8x256xf32>
    %cst_14 = arith.constant 1.000000e-01 : f32
    %34 = vector.broadcast %cst_14 : f32 to vector<8x256xf32>
    %35 = arith.mulf %34, %31 : vector<8x256xf32>
    %36 = arith.select %33, %31, %35 : vector<8x256xi1>, vector<8x256xf32>
    %c0_15 = arith.constant 0 : index
    %c0_16 = arith.constant 0 : index
    %37 = vector.load %arg4[%c0_15, %c0_16] : memref<260x256xf32, #tpu.memory_space<vmem>>, vector<256x256xf32>
    %cst_17 = arith.constant dense<0.000000e+00> : vector<8x256xf32>
    %38 = tpu.matmul %36, %37, %cst_17 {dimension_numbers = #tpu.dot_dimension_numbers<[1], [0], [0], [1], [0, 0, 1, 1], [], []>} : vector<8x256xf32>, vector<256x256xf32>, vector<8x256xf32> -> vector<8x256xf32>
    %c256 = arith.constant 256 : index
    %c0_18 = arith.constant 0 : index
    %39 = vector.load %arg4[%c256, %c0_18] : memref<260x256xf32, #tpu.memory_space<vmem>>, vector<1x256xf32>
    %40 = vector.broadcast %39 : vector<1x256xf32> to vector<8x256xf32>
    %41 = arith.addf %38, %40 : vector<8x256xf32>
    %c257 = arith.constant 257 : index
    %c0_19 = arith.constant 0 : index
    %42 = vector.load %arg4[%c257, %c0_19] : memref<260x256xf32, #tpu.memory_space<vmem>>, vector<1x256xf32>
    %c258 = arith.constant 258 : index
    %c0_20 = arith.constant 0 : index
    %43 = vector.load %arg4[%c258, %c0_20] : memref<260x256xf32, #tpu.memory_space<vmem>>, vector<1x256xf32>
    %cst_21 = arith.constant dense<0.000000e+00> : vector<8xf32>
    %44 = vector.multi_reduction <add>, %41, %cst_21 [1] : vector<8x256xf32> to vector<8xf32>
    %45 = vector.shape_cast %44 : vector<8xf32> to vector<8x1xf32>
    %cst_22 = arith.constant 3.906250e-03 : f32
    %46 = vector.broadcast %cst_22 : f32 to vector<8x1xf32>
    %47 = arith.mulf %45, %46 : vector<8x1xf32>
    %48 = arith.mulf %41, %41 : vector<8x256xf32>
    %cst_23 = arith.constant dense<0.000000e+00> : vector<8xf32>
    %49 = vector.multi_reduction <add>, %48, %cst_23 [1] : vector<8x256xf32> to vector<8xf32>
    %50 = vector.shape_cast %49 : vector<8xf32> to vector<8x1xf32>
    %cst_24 = arith.constant 3.906250e-03 : f32
    %51 = vector.broadcast %cst_24 : f32 to vector<8x1xf32>
    %52 = arith.mulf %50, %51 : vector<8x1xf32>
    %53 = arith.mulf %47, %47 : vector<8x1xf32>
    %54 = arith.subf %52, %53 : vector<8x1xf32>
    %55 = vector.broadcast %47 : vector<8x1xf32> to vector<8x256xf32>
    %56 = arith.subf %41, %55 : vector<8x256xf32>
    %cst_25 = arith.constant 9.99999974E-6 : f32
    %57 = vector.broadcast %cst_25 : f32 to vector<8x1xf32>
    %58 = arith.addf %54, %57 : vector<8x1xf32>
    %59 = math.rsqrt %58 : vector<8x1xf32>
    %60 = vector.broadcast %59 : vector<8x1xf32> to vector<8x256xf32>
    %61 = arith.mulf %56, %60 : vector<8x256xf32>
    %62 = vector.broadcast %42 : vector<1x256xf32> to vector<8x256xf32>
    %63 = arith.mulf %61, %62 : vector<8x256xf32>
    %64 = vector.broadcast %43 : vector<1x256xf32> to vector<8x256xf32>
    %65 = arith.addf %63, %64 : vector<8x256xf32>
    %cst_26 = arith.constant 0.000000e+00 : f32
    %66 = vector.broadcast %cst_26 : f32 to vector<8x256xf32>
    %67 = arith.cmpf ogt, %65, %66 : vector<8x256xf32>
    %cst_27 = arith.constant 1.000000e-01 : f32
    %68 = vector.broadcast %cst_27 : f32 to vector<8x256xf32>
    %69 = arith.mulf %68, %65 : vector<8x256xf32>
    %70 = arith.select %67, %65, %69 : vector<8x256xi1>, vector<8x256xf32>
    %c259 = arith.constant 259 : index
    %c0_28 = arith.constant 0 : index
    %71 = vector.load %arg4[%c259, %c0_28] : memref<260x256xf32, #tpu.memory_space<vmem>>, vector<1x256xf32>
    %72 = vector.broadcast %71 : vector<1x256xf32> to vector<8x256xf32>
    %73 = arith.mulf %70, %72 : vector<8x256xf32>
    %cst_29 = arith.constant dense<0.000000e+00> : vector<8xf32>
    %74 = vector.multi_reduction <add>, %73, %cst_29 [1] : vector<8x256xf32> to vector<8xf32>
    %75 = vector.shape_cast %74 : vector<8xf32> to vector<8x1xf32>
    %c0_30 = arith.constant 0 : index
    %c0_31 = arith.constant 0 : index
    %76 = memref.load %arg5[%c0_30, %c0_31] : memref<1x1xf32, #tpu.memory_space<smem>>
    %77 = vector.broadcast %76 : f32 to vector<8x1xf32>
    %78 = arith.addf %75, %77 : vector<8x1xf32>
    %79 = math.tanh %78 : vector<8x1xf32>
    %80 = tpu.transpose %79, [1, 0] : vector<8x1xf32> -> vector<1x8xf32>
    %c0_32 = arith.constant 0 : index
    %c0_33 = arith.constant 0 : index
    %c0_34 = arith.constant 0 : index
    %81 = vector.load %arg6[%c0_32, %c0_33, %c0_34] : memref<1x1x8xf32, #tpu.memory_space<vmem>>, vector<1x1x8xf32>
    %82 = vector.shape_cast %81 : vector<1x1x8xf32> to vector<1x8xf32>
    %83 = vector.shape_cast %80 : vector<1x8xf32> to vector<1x1x8xf32>
    tpu.vector_store %arg6[%c0_32, %c0_33, %c0_34], %83 {strides = array<i32>} : memref<1x1x8xf32, #tpu.memory_space<vmem>>, vector<1x1x8xf32>,
    return
  }
  func.func @transform_0(%arg0: i32) -> (i32, i32) {
    %c0_i32 = arith.constant 0 : i32
    %c0_i32_0 = arith.constant 0 : i32
    return %arg0, %c0_i32 : i32, i32
  }
  func.func @transform_1(%arg0: i32) -> (i32, i32) {
    %c0_i32 = arith.constant 0 : i32
    %c0_i32_0 = arith.constant 0 : i32
    return %arg0, %c0_i32 : i32, i32
  }
  func.func @transform_2(%arg0: i32) -> (i32, i32) {
    %c0_i32 = arith.constant 0 : i32
    %c0_i32_0 = arith.constant 0 : i32
    %c0_i32_1 = arith.constant 0 : i32
    return %c0_i32, %c0_i32_0 : i32, i32
  }
  func.func @transform_3(%arg0: i32) -> (i32, i32) {
    %c0_i32 = arith.constant 0 : i32
    %c0_i32_0 = arith.constant 0 : i32
    %c0_i32_1 = arith.constant 0 : i32
    return %c0_i32, %c0_i32_0 : i32, i32
  }
  func.func @transform_4(%arg0: i32) -> (i32, i32) {
    %c0_i32 = arith.constant 0 : i32
    %c0_i32_0 = arith.constant 0 : i32
    %c0_i32_1 = arith.constant 0 : i32
    return %c0_i32, %c0_i32_0 : i32, i32
  }
  func.func @transform_5(%arg0: i32) -> (i32, i32, i32) {
    %c0_i32 = arith.constant 0 : i32
    %c0_i32_0 = arith.constant 0 : i32
    %c0_i32_1 = arith.constant 0 : i32
    return %arg0, %c0_i32, %c0_i32_0 : i32, i32, i32
  }
}

</mosaic_0001>

<bundles_post_ra>
// kernel: reward_forward.1
= control target key start
LH: loop header
LB: loop body
LE: loop exit
PB: predicated region body
PF: predicated region fallthrough
CT: control target
= control target key end

     0   :  { %11 = vsyncpa [#allocation4], 0  ;;  %s683_s0 = inlined_call_operand.hbm [shape: f32[8,24], index: 0, kind: input, shape index: {}]   ;;  %s684_s1 = inlined_call_operand.hbm [shape: f32[8,8], index: 1, kind: input, shape index: {}]   ;;  %s685_s2 = inlined_call_operand.hbm [shape: f32[35,256], index: 2, kind: input, shape index: {}]   ;;  %s686_s3 = inlined_call_operand.hbm [shape: f32[260,256], index: 3, kind: input, shape index: {}]   ;;  %s687_s4 = inlined_call_operand.<no memory space> [shape: f32[1,1], index: 4, kind: input, shape index: {}]   ;;  %s688_s5 = inlined_call_operand.hbm [shape: f32[1,1,8], index: 5, kind: output, shape index: {}]  }
   0x1   :  { %12 = vsyncpa [#allocation7], 0 }
   0x2   :  { %13 = vsyncpa [#allocation10], 0  ;;  %s31_s20 = sshll.u32 %s684_s1, 4  ;;  %s32_s20 = int_to_ptr.hbm [resolvable:$true] %s31_s20 }
   0x3   :  { %14 = vsyncpa [#allocation5], 0  ;;  %s615_s21 = smov [#allocation6]   ;;  %s20_s25 = sshll.u32 %s683_s0, 4  ;;  %s21_s25 = int_to_ptr.hbm [resolvable:$true] %s20_s25 }
   0x4   :  { %s33_s22 = sshll.u32 %s615_s21, 4  ;;  %s616_s26 = smov [#allocation3]   ;;  %s34_s22 = int_to_ptr.vmem [resolvable:$true] %s33_s22 }
   0x5   :  { %36 = dma.hbm_to_vmem [thread:$0]  %s32_s20, 128, %s34_s22, [#allocation7]  }
   0x6   :  { %s22_s27 = sshll.u32 %s616_s26, 4  ;;  %s41_s30 = sshll.u32 %s685_s2, 4  ;;  %s23_s27 = int_to_ptr.vmem [resolvable:$true] %s22_s27  ;;  %s42_s30 = int_to_ptr.hbm [resolvable:$true] %s41_s30 }
   0x7   :  { %25 = dma.hbm_to_vmem [thread:$0]  %s21_s25, 128, %s23_s27, [#allocation4]  }
   0x8   :  { %s617_s1 = smov [#allocation8]   ;;  %s54_s9 = sshll.u32 %s686_s3, 4  ;;  %s55_s9 = int_to_ptr.hbm [resolvable:$true] %s54_s9 }
   0x9   :  { %s43_s6 = sshll.u32 %s617_s1, 4  ;;  %s618_s10 = smov 256   ;;  %s44_s6 = int_to_ptr.vmem [resolvable:$true] %s43_s6 }
   0xa   :  { %s619_s0 = smov 16   ;;  %s620_s11 = smov [#allocation9]  }
   0xb   :  { %49 = dma.hbm_to_vmem [thread:$0]  %s42_s30, 1280, %s44_s6, [#allocation7], %s618_s10, %s618_s10, %s619_s0  }
   0xc   :  { %s56_s12 = sshll.u32 %s620_s11, 4  ;;  %s57_s12 = int_to_ptr.vmem [resolvable:$true] %s56_s12 }
   0xd   :  { %62 = dma.hbm_to_vmem [thread:$0]  %s55_s9, 8448, %s57_s12, [#allocation10], %s618_s10, %s618_s10, %s619_s0  }
   0xe   :  { %607 = dma.done.wait [#allocation4], 128  }
   0xf   :  { %608 = vsyncadd [#allocation4], 4294967168 }
  0x10   :  { %609 = dma.done.wait [#allocation7], 1408  }
  0x11   :  { %610 = vsyncadd [#allocation7], 4294965888 }
  0x12   :  { %611 = dma.done.wait [#allocation10], 8448  }
  0x13   :  { %612 = vsyncadd [#allocation10], 4294958848  ;;  %v82_v0 = vld [vmem:[#allocation6] sm:$0xff]  ;;  %v95_v1 = vld [vmem:[#allocation8 + $0x30] sm:$0xff]  ;;  %s621_s2 = smov 24   ;;  %vm87_vm0 = vcmask 195584  }
  0x14   :  { %v96_v2 = vld [vmem:[#allocation8 + $0x38] sm:$0xff]  ;;  %84 = vrot.lane.b32.xlu0 %v82_v0, %s621_s2  ;;  %120 = vmatpush.msra.mxu0 %v95_v1  ;;  %v93_v3 = vld [vmem:[#allocation8 + $0x20] sm:$0xff]  ;;  %v94_v4 = vld [vmem:[#allocation8 + $0x28] sm:$0xff]  ;;  %vm104_vm1 = vcmask 261120   ;;  %s622_s14 = smov [#allocation11]   ;;  %s458_s18 = sshll.u32 %s688_s5, 4  ;;  %s459_s18 = int_to_ptr.hbm [resolvable:$true] %s458_s18 }
  0x15   :  { %140 = vmatpush.msra.mxu1 %v96_v2  ;;  %v91_v5 = vld [vmem:[#allocation8 + $0x10] sm:$0xff]  ;;  %v92_v6 = vld [vmem:[#allocation8 + $0x18] sm:$0xff]  ;;  %v89_v7 = vld [vmem:[#allocation8] sm:$0xff]  ;;  %s456_s15 = sshll.u32 %s622_s14, 4  ;;  %vm449_vm12 = vcmask 57344   ;;  %s457_s15 = int_to_ptr.vmem [resolvable:$true] %s456_s15 }
  0x16   :  { %121 = vmatpush.msra.mxu0 %v93_v3  ;;  %v90_v8 = vld [vmem:[#allocation8 + $0x8] sm:$0xff]  ;;  %v81_v9 = vld [vmem:[#allocation3] sm:$0xff]  ;;  %v229_v23 = vld [vmem:[#allocation9 + $0xf0] sm:$0xff] }
  0x17   :  { %141 = vmatpush.msra.mxu1 %v94_v4  ;;  %v98_v12 = vld [vmem:[#allocation8 + $0x40] ss:$8 sm:$0x3]  ;;  %270 = vmatpush.msra.mxu2 %v229_v23  ;;  %v227_v27 = vld [vmem:[#allocation9 + $0xe0] sm:$0xff]  ;;  %v228_v29 = vld [vmem:[#allocation9 + $0xe8] sm:$0xff] }
  0x18   :  { %122 = vmatpush.msra.mxu0 %v91_v5  ;;  %v100_v13 = vperm.slane %v98_v12, 0  ;;  %v101_v14 = vperm.slane %v98_v12, 1  ;;  %v261_v24 = vld [vmem:[#allocation9 + $0x1f0] sm:$0xff]  ;;  %v230_v25 = vld [vmem:[#allocation9 + $0xf8] sm:$0xff]  ;;  %v259_v28 = vld [vmem:[#allocation9 + $0x1e0] sm:$0xff] }
  0x19   :  { %142 = vmatpush.msra.mxu1 %v92_v6  ;;  %290 = vmatpush.msra.mxu3 %v261_v24  ;;  %v262_v26 = vld [vmem:[#allocation9 + $0x1f8] sm:$0xff]  ;;  %v260_v30 = vld [vmem:[#allocation9 + $0x1e8] sm:$0xff]  ;;  %v225_v31 = vld [vmem:[#allocation9 + $0xd0] sm:$0xff] }
  0x1a   :  { %123 = vmatpush.msra.mxu0 %v89_v7  ;;  %271 = vmatpush.msra.mxu2 %v227_v27  ;;  %v257_v32 = vld [vmem:[#allocation9 + $0x1d0] sm:$0xff]  ;;  %v226_v33 = vld [vmem:[#allocation9 + $0xd8] sm:$0xff]  ;;  %v223_v35 = vld [vmem:[#allocation9 + $0xc0] sm:$0xff] }
  0x1b   :  { %143 = vmatpush.msra.mxu1 %v90_v8  ;;  %291 = vmatpush.msra.mxu3 %v259_v28  ;;  %v258_v34 = vld [vmem:[#allocation9 + $0x1d8] sm:$0xff]  ;;  %v255_v36 = vld [vmem:[#allocation9 + $0x1c0] sm:$0xff]  ;;  %v224_v37 = vld [vmem:[#allocation9 + $0xc8] sm:$0xff] }
  0x1c   :  { %310 = vmatpush.msrb.mxu0 %v230_v25  ;;  %272 = vmatpush.msra.mxu2 %v225_v31  ;;  %v256_v38 = vld [vmem:[#allocation9 + $0x1c8] sm:$0xff]  ;;  %v221_v39 = vld [vmem:[#allocation9 + $0xb0] sm:$0xff]  ;;  %v222_v41 = vld [vmem:[#allocation9 + $0xb8] sm:$0xff] }
  0x1d   :  { %330 = vmatpush.msrb.mxu1 %v262_v26  ;;  %292 = vmatpush.msra.mxu3 %v257_v32  ;;  %v253_v40 = vld [vmem:[#allocation9 + $0x1b0] sm:$0xff]  ;;  %v254_v42 = vld [vmem:[#allocation9 + $0x1b8] sm:$0xff]  ;;  %v219_v43 = vld [vmem:[#allocation9 + $0xa0] sm:$0xff] }
  0x1e   :  { %311 = vmatpush.msrb.mxu0 %v228_v29  ;;  %273 = vmatpush.msra.mxu2 %v223_v35  ;;  %v251_v44 = vld [vmem:[#allocation9 + $0x1a0] sm:$0xff]  ;;  %v220_v45 = vld [vmem:[#allocation9 + $0xa8] sm:$0xff]  ;;  %v217_v47 = vld [vmem:[#allocation9 + $0x90] sm:$0xff] }
  0x1f   :  { %331 = vmatpush.msrb.mxu1 %v260_v30  ;;  %293 = vmatpush.msra.mxu3 %v255_v36  ;;  %v252_v46 = vld [vmem:[#allocation9 + $0x1a8] sm:$0xff]  ;;  %v249_v48 = vld [vmem:[#allocation9 + $0x190] sm:$0xff]  ;;  %v218_v49 = vld [vmem:[#allocation9 + $0x98] sm:$0xff] }
  0x20   :  { %312 = vmatpush.msrb.mxu0 %v226_v33  ;;  %274 = vmatpush.msra.mxu2 %v221_v39  ;;  %v250_v50 = vld [vmem:[#allocation9 + $0x198] sm:$0xff]  ;;  %v215_v51 = vld [vmem:[#allocation9 + $0x80] sm:$0xff]  ;;  %v216_v53 = vld [vmem:[#allocation9 + $0x88] sm:$0xff] }
  0x21   :  { %332 = vmatpush.msrb.mxu1 %v258_v34  ;;  %294 = vmatpush.msra.mxu3 %v253_v40  ;;  %v247_v52 = vld [vmem:[#allocation9 + $0x180] sm:$0xff]  ;;  %v248_v54 = vld [vmem:[#allocation9 + $0x188] sm:$0xff]  ;;  %v213_v55 = vld [vmem:[#allocation9 + $0x70] sm:$0xff] }
  0x22   :  { %313 = vmatpush.msrb.mxu0 %v224_v37  ;;  %275 = vmatpush.msra.mxu2 %v219_v43  ;;  %v245_v56 = vld [vmem:[#allocation9 + $0x170] sm:$0xff]  ;;  %v214_v57 = vld [vmem:[#allocation9 + $0x78] sm:$0xff]  ;;  %v211_v59 = vld [vmem:[#allocation9 + $0x60] sm:$0xff] }
  0x23   :  { %333 = vmatpush.msrb.mxu1 %v256_v38  ;;  %295 = vmatpush.msra.mxu3 %v251_v44  ;;  %v246_v58 = vld [vmem:[#allocation9 + $0x178] sm:$0xff]  ;;  %v243_v60 = vld [vmem:[#allocation9 + $0x160] sm:$0xff]  ;;  %v212_v61 = vld [vmem:[#allocation9 + $0x68] sm:$0xff] }
  0x24   :  { %314 = vmatpush.msrb.mxu0 %v222_v41  ;;  %276 = vmatpush.msra.mxu2 %v217_v47  ;;  %v244_v62 = vld [vmem:[#allocation9 + $0x168] sm:$0xff]  ;;  %v209_v63 = vld [vmem:[#allocation9 + $0x50] sm:$0xff]  ;;  %v210_v1 = vld [vmem:[#allocation9 + $0x58] sm:$0xff] }
  0x25   :  { %334 = vmatpush.msrb.mxu1 %v254_v42  ;;  %296 = vmatpush.msra.mxu3 %v249_v48  ;;  %v241_v0 = vld [vmem:[#allocation9 + $0x150] sm:$0xff]  ;;  %v242_v2 = vld [vmem:[#allocation9 + $0x158] sm:$0xff]  ;;  %v207_v3 = vld [vmem:[#allocation9 + $0x40] sm:$0xff] }
  0x26   :  { %315 = vmatpush.msrb.mxu0 %v220_v45  ;;  %277 = vmatpush.msra.mxu2 %v215_v51  ;;  %v239_v4 = vld [vmem:[#allocation9 + $0x140] sm:$0xff]  ;;  %v208_v5 = vld [vmem:[#allocation9 + $0x48] sm:$0xff]  ;;  %v205_v7 = vld [vmem:[#allocation9 + $0x30] sm:$0xff] }
  0x27   :  { %335 = vmatpush.msrb.mxu1 %v252_v46  ;;  %297 = vmatpush.msra.mxu3 %v247_v52  ;;  %v240_v6 = vld [vmem:[#allocation9 + $0x148] sm:$0xff]  ;;  %v237_v8 = vld [vmem:[#allocation9 + $0x130] sm:$0xff]  ;;  %v235_v12 = vld [vmem:[#allocation9 + $0x120] sm:$0xff] }
  0x28   :  { %316 = vmatpush.msrb.mxu0 %v218_v49  ;;  %278 = vmatpush.msra.mxu2 %v213_v55  ;;  %v231_v23 = vld [vmem:[#allocation9 + $0x100] sm:$0xff]  ;;  %v200_v25 = vld [vmem:[#allocation9 + $0x8] sm:$0xff]  ;;  %v149_v37 = vld [vmem:[#allocation8 + $0x41] ss:$8 sm:$0x3] }
  0x29   :  { %336 = vmatpush.msrb.mxu1 %v250_v50  ;;  %298 = vmatpush.msra.mxu3 %v245_v56  ;;  %v232_v26 = vld [vmem:[#allocation9 + $0x108] sm:$0xff]  ;;  %v151_v39 = vld [vmem:[#allocation8 + $0x42] ss:$8 sm:$0x3]  ;;  %v180_v42 = vperm.slane %v149_v37, 0  ;;  %v181_v43 = vperm.slane %v149_v37, 1 }
  0x2a   :  { %317 = vmatpush.msrb.mxu0 %v216_v53  ;;  %279 = vmatpush.msra.mxu2 %v211_v59  ;;  %v187_v46 = vperm.slane %v151_v39, 0  ;;  %v188_v48 = vperm.slane %v151_v39, 1 }
  0x2b   :  { %337 = vmatpush.msrb.mxu1 %v248_v54  ;;  %299 = vmatpush.msra.mxu3 %v243_v60 }
  0x2c   :  { %318 = vmatpush.msrb.mxu0 %v214_v57  ;;  %280 = vmatpush.msra.mxu2 %v209_v63 }
  0x2d   :  { %338 = vmatpush.msrb.mxu1 %v246_v58  ;;  %300 = vmatpush.msra.mxu3 %v241_v0 }
  0x2e   :  { %319 = vmatpush.msrb.mxu0 %v212_v61  ;;  %281 = vmatpush.msra.mxu2 %v207_v3 }
  0x2f   :  { %339 = vmatpush.msrb.mxu1 %v244_v62  ;;  %301 = vmatpush.msra.mxu3 %v239_v4 }
  0x30   :  { %320 = vmatpush.msrb.mxu0 %v210_v1  ;;  %282 = vmatpush.msra.mxu2 %v205_v7 }
  0x31   :  { %340 = vmatpush.msrb.mxu1 %v242_v2  ;;  %302 = vmatpush.msra.mxu3 %v237_v8 }
  0x32   :  { %321 = vmatpush.msrb.mxu0 %v208_v5 }
  0x33   :  { %341 = vmatpush.msrb.mxu1 %v240_v6  ;;  %303 = vmatpush.msra.mxu3 %v235_v12 }
  0x86   :  { %v85_v10 = vpop.permute.xlu0 %84 }
  0x87   :  { %v88_v11 = vsel %vm87_vm0, %v81_v9, %v85_v10  ;;  %v206_v9 = vld [vmem:[#allocation9 + $0x38] sm:$0xff] }
  0x88   :  { %470 = vmatmul.msk.f32.vlgmr.msra.gmra.mxu0 %vm104_vm1, %v88_v11  ;;  %471 = vmatmul.msk.f32.vlgmr.msra.gmra.mxu1 %vm104_vm1, %v88_v11  ;;  %v238_v10 = vld [vmem:[#allocation9 + $0x138] sm:$0xff]  ;;  %v203_v11 = vld [vmem:[#allocation9 + $0x20] sm:$0xff] }
  0x89   :  { %322 = vmatpush.msrb.mxu0 %v206_v9  ;;  %342 = vmatpush.msrb.mxu1 %v238_v10 }
  0x8a   :  { %283 = vmatpush.msra.mxu2 %v203_v11 }
 0x105   :  { %v125_v15 = vpop.f32.mrf.mxu0  ;;  %v145_v16 = vpop.f32.mrf.mxu1 }
 0x106   :  { %v665_v17 = vadd.f32 %v125_v15, %v100_v13  ;;  %v667_v18 = vadd.f32 %v145_v16, %v101_v14  ;;  %v204_v13 = vld [vmem:[#allocation9 + $0x28] sm:$0xff]  ;;  %v201_v15 = vld [vmem:[#allocation9 + $0x10] sm:$0xff] }
 0x107   :  { %v236_v14 = vld [vmem:[#allocation9 + $0x128] sm:$0xff]  ;;  %v233_v16 = vld [vmem:[#allocation9 + $0x110] sm:$0xff]  ;;  %323 = vmatpush.msrb.mxu0 %v204_v13  ;;  %284 = vmatpush.msra.mxu2 %v201_v15 }
 0x108   :  { %v152_v19 = vadd.f32 %v667_v18, %v665_v17  ;;  %v156_v20 = vmul.f32 %v665_v17, %v665_v17  ;;  %v157_v21 = vmul.f32 %v667_v18, %v667_v18  ;;  %343 = vmatpush.msrb.mxu1 %v236_v14  ;;  %304 = vmatpush.msra.mxu3 %v233_v16 }
 0x10a   :  { %153 = vadd.xlane.f32.xlu0 %v152_v19  ;;  %v158_v22 = vadd.f32 %v157_v21, %v156_v20  ;;  %v202_v19 = vld [vmem:[#allocation9 + $0x18] sm:$0xff]  ;;  %305 = vmatpush.msra.mxu3 %v231_v23 }
 0x10b   :  { %v234_v20 = vld [vmem:[#allocation9 + $0x118] sm:$0xff]  ;;  %324 = vmatpush.msrb.mxu0 %v202_v19 }
 0x10c   :  { %159 = vadd.xlane.f32.xlu1 %v158_v22  ;;  %v199_v22 = vld [vmem:[#allocation9] sm:$0xff]  ;;  %344 = vmatpush.msrb.mxu1 %v234_v20 }
 0x10d   :  { %285 = vmatpush.msra.mxu2 %v199_v22  ;;  %325 = vmatpush.msrb.mxu0 %v200_v25  ;;  %v351_v20 = vld [vmem:[#allocation9 + $0x201] ss:$8 sm:$0x3]  ;;  %v353_v22 = vld [vmem:[#allocation9 + $0x202] ss:$8 sm:$0x3] }
 0x10e   :  { %345 = vmatpush.msrb.mxu1 %v232_v26  ;;  %v382_v25 = vperm.slane %v351_v20, 0  ;;  %v383_v26 = vperm.slane %v351_v20, 1 }
 0x17d   :  { %v154_v21 = vpop.xlane.xlu0 %153 }
 0x17e   :  { %v155_v24 = vmul.f32 0.00390625, %v154_v21 }
 0x17f   :  { %v160_v27 = vpop.xlane.xlu1 %159 }
 0x180   :  { %v162_v28 = vmul.f32 %v155_v24, %v155_v24  ;;  %v161_v29 = vmul.f32 0.00390625, %v160_v27  ;;  %v164_v40 = vsub.f32 %v665_v17, %v155_v24  ;;  %v165_v41 = vsub.f32 %v667_v18, %v155_v24  ;;  %v264_v18 = vld [vmem:[#allocation9 + $0x200] ss:$8 sm:$0x3] }
 0x181   :  { %v267_v56 = vperm.slane %v264_v18, 1  ;;  %v266_v59 = vperm.slane %v264_v18, 0 }
 0x182   :  { %v163_v30 = vsub.f32 %v161_v29, %v162_v28 }
 0x184   :  { %v166_v31 = vadd.f32 1e-05, %v163_v30  ;;  %v389_v30 = vperm.slane %v353_v22, 0 }
 0x186   :  { %481 = vrsqrt.f32 %v166_v31  ;;  %vm173_vm3 = vweird.f32 %v166_v31 }
 0x18c   :  { %v482_v32 = vpop.eup %481 }
 0x18d   :  { %v168_v33 = vmul.f32 %v482_v32, %v166_v31  ;;  %vm174_vm2 = vweird.f32 %v482_v32  ;;  %v390_v31 = vperm.slane %v353_v22, 1 }
 0x18e   :  { %vm175_vm4 = vmor %vm173_vm3, %vm174_vm2 }
 0x18f   :  { %v169_v34 = vmul.f32 %v482_v32, %v168_v33 }
 0x191   :  { %v170_v35 = vmul.f32 0.5, %v169_v34  ;;  %v402_v34 = vld [vmem:[#allocation9 + $0x203] ss:$8 sm:$0x3] }
 0x192   :  { %v404_v37 = vperm.slane %v402_v34, 0 }
 0x193   :  { %v171_v36 = vsub.f32 1.5, %v170_v35 }
 0x195   :  { %v172_v38 = vmul.f32 %v482_v32, %v171_v36 }
 0x197   :  { %v176_v44 = vsel %vm175_vm4, %v482_v32, %v172_v38  ;;  %v405_v38 = vperm.slane %v402_v34, 1 }
 0x198   :  { %v177_v45 = vmul.f32 %v176_v44, %v164_v40  ;;  %v178_v47 = vmul.f32 %v176_v44, %v165_v41 }
 0x19a   :  { %v184_v49 = vmul.f32 %v180_v42, %v177_v45  ;;  %v185_v50 = vmul.f32 %v181_v43, %v178_v47 }
 0x19c   :  { %v191_v51 = vadd.f32 %v187_v46, %v184_v49  ;;  %v192_v52 = vadd.f32 %v188_v48, %v185_v50  ;;  %v414_v46 = vstv %s687_s4 }
 0x19e   :  { %vm193_vm5 = vcmp.gt.f32.partialorder %v191_v51, 0.0  ;;  %v195_v53 = vmul.f32 0.1, %v191_v51  ;;  %vm194_vm6 = vcmp.gt.f32.partialorder %v192_v52, 0.0  ;;  %v196_v54 = vmul.f32 0.1, %v192_v52 }
 0x1a0   :  { %v197_v55 = vsel %vm193_vm5, %v191_v51, %v195_v53  ;;  %v198_v17 = vsel %vm194_vm6, %v192_v52, %v196_v54 }
 0x1a1   :  { %286 = vmatmul.f32.vlgmr.msra.gmra.mxu2 %v197_v55  ;;  %306 = vmatmul.f32.vlgmr.msra.gmra.mxu3 %v198_v17 }
 0x1a2   :  { %326 = vmatmul.f32.vlgmr.msrb.gmra.mxu0 %v197_v55  ;;  %346 = vmatmul.f32.vlgmr.msrb.gmra.mxu1 %v198_v17 }
 0x21f   :  { %v327_v57 = vpop.f32.mrf.mxu0  ;;  %v347_v60 = vpop.f32.mrf.mxu1 }
 0x220   :  { %v328_v58 = vadd.f32 %v327_v57, %v267_v56 }
 0x222   :  { %v348_v62 = vadd.f32 %v347_v60, %v328_v58 }
 0x224   :  { %v287_v61 = vpop.f32.mrf.mxu2  ;;  %v307_v0 = vpop.f32.mrf.mxu3  ;;  %v359_v4 = vmul.f32 %v348_v62, %v348_v62 }
 0x225   :  { %v288_v63 = vadd.f32 %v287_v61, %v266_v59 }
 0x227   :  { %v308_v1 = vadd.f32 %v307_v0, %v288_v63 }
 0x229   :  { %v354_v2 = vadd.f32 %v348_v62, %v308_v1  ;;  %v358_v3 = vmul.f32 %v308_v1, %v308_v1 }
 0x22b   :  { %355 = vadd.xlane.f32.xlu1 %v354_v2  ;;  %v360_v5 = vadd.f32 %v359_v4, %v358_v3 }
 0x22d   :  { %361 = vadd.xlane.f32.xlu2 %v360_v5 }
 0x29e   :  { %v356_v6 = vpop.xlane.xlu1 %355 }
 0x29f   :  { %v357_v7 = vmul.f32 0.00390625, %v356_v6 }
 0x2a0   :  { %v362_v8 = vpop.xlane.xlu2 %361 }
 0x2a1   :  { %v363_v9 = vmul.f32 0.00390625, %v362_v8  ;;  %v364_v10 = vmul.f32 %v357_v7, %v357_v7  ;;  %v366_v23 = vsub.f32 %v308_v1, %v357_v7  ;;  %v367_v24 = vsub.f32 %v348_v62, %v357_v7 }
 0x2a3   :  { %v365_v11 = vsub.f32 %v363_v9, %v364_v10 }
 0x2a5   :  { %v368_v12 = vadd.f32 1e-05, %v365_v11 }
 0x2a7   :  { %483 = vrsqrt.f32 %v368_v12  ;;  %vm375_vm8 = vweird.f32 %v368_v12 }
 0x2ad   :  { %v484_v13 = vpop.eup %483 }
 0x2ae   :  { %v370_v14 = vmul.f32 %v484_v13, %v368_v12  ;;  %vm376_vm7 = vweird.f32 %v484_v13 }
 0x2af   :  { %vm377_vm9 = vmor %vm375_vm8, %vm376_vm7 }
 0x2b0   :  { %v371_v15 = vmul.f32 %v484_v13, %v370_v14 }
 0x2b2   :  { %v372_v16 = vmul.f32 0.5, %v371_v15 }
 0x2b4   :  { %v373_v19 = vsub.f32 1.5, %v372_v16 }
 0x2b6   :  { %v374_v21 = vmul.f32 %v484_v13, %v373_v19 }
 0x2b8   :  { %v378_v27 = vsel %vm377_vm9, %v484_v13, %v374_v21 }
 0x2b9   :  { %v379_v28 = vmul.f32 %v378_v27, %v366_v23  ;;  %v380_v29 = vmul.f32 %v378_v27, %v367_v24 }
 0x2bb   :  { %v386_v32 = vmul.f32 %v382_v25, %v379_v28  ;;  %v387_v33 = vmul.f32 %v383_v26, %v380_v29 }
 0x2bd   :  { %v393_v35 = vadd.f32 %v389_v30, %v386_v32  ;;  %v394_v36 = vadd.f32 %v390_v31, %v387_v33 }
 0x2bf   :  { %vm395_vm10 = vcmp.gt.f32.partialorder %v393_v35, 0.0  ;;  %vm396_vm11 = vcmp.gt.f32.partialorder %v394_v36, 0.0  ;;  %v397_v39 = vmul.f32 0.1, %v393_v35  ;;  %v398_v40 = vmul.f32 0.1, %v394_v36 }
 0x2c1   :  { %v399_v41 = vsel %vm395_vm10, %v393_v35, %v397_v39  ;;  %v400_v42 = vsel %vm396_vm11, %v394_v36, %v398_v40 }
 0x2c2   :  { %v408_v43 = vmul.f32 %v404_v37, %v399_v41  ;;  %v409_v44 = vmul.f32 %v405_v38, %v400_v42 }
 0x2c4   :  { %v410_v45 = vadd.f32 %v409_v44, %v408_v43 }
 0x2c6   :  { %411 = vadd.xlane.f32.xlu2 %v410_v45 }
 0x339   :  { %v412_v47 = vpop.xlane.xlu2 %411 }
 0x33a   :  { %v415_v48 = vadd.f32 %v414_v46, %v412_v47 }
 0x33c   :  { %485 = vtanh.f32 %v415_v48 }
 0x342   :  { %v486_v49 = vpop.eup %485 }
 0x343   :  { %417 = vxpose.xlu1.b32.start.end [1/1] (short) (narrow) %v486_v49, 8 }
 0x3e7   :  { %v433_v50 = vpop.trf.xlu1 }
 0x3e8   :  { %450 = vst.msk [vmem:[#allocation11] sm:$0x1] %vm449_vm12, %v433_v50 }
 0x3e9   :  { %461 = dma.vmem_to_hbm [thread:$0]  %s457_s15, 16, %s459_s18, [#allocation5]  }
 0x3ea   :  { %613 = dma.done.wait [#allocation5], 16  }
 0x3eb   :  { %614 = vsyncadd [#allocation5], 4294967280 }
 0x3ec   :  { %466 = vsyncpa [#allocation4], 1 }
 0x3ed   :  { %467 = vsyncpa [#allocation7], 1 }
 0x3ee   :  { %468 = vsyncpa [#allocation10], 1 }
 0x3ef   :  { %469 = vsyncpa [#allocation5], 1 }

</bundles_post_ra>
